<compile_context>
chip_gen: v7x
topology: tpu7x:2x2x1
jax: 0.10.0
libtpu: 0.0.40
codegen_flags: <defaults>
</compile_context>

<pallas_src>
import functools

import numpy as np
import jax
import jax.numpy as jnp
from jax import lax
from jax.experimental import pallas as pl
from jax.experimental.pallas import tpu as pltpu

_EPS = 1e-8                       # F.cosine_similarity eps (per-row norm clamp)
_OUT_LANES = 128                  # lane-dense partial-sum rows (lanes 0..2 used)
_OUT_SUBS = 8                     # sublane-padded output block height
_VMEM_LIMIT = 48 * 1024 * 1024    # explicit scoped-VMEM limit, safe on v5e/v6e/v7x
_TILE_BUDGET = 24 * 1024 * 1024   # budget for double-buffered streams + in-kernel temps


def _round_up(x, m):
    return ((x + m - 1) // m) * m


def _normalize_rows(x):
    """max(||row||, eps) normalization in f32 (matches F.cosine_similarity)."""
    x = x.astype(jnp.float32)
    nrm = jnp.sqrt(jnp.sum(x * x, axis=-1, keepdims=True))
    return x / jnp.maximum(nrm, _EPS)


def _pad_rows(x, rows, value=0):
    pad = rows - x.shape[0]
    if pad == 0:
        return x
    cfg = [(0, pad)] + [(0, 0)] * (x.ndim - 1)
    return jnp.pad(x, cfg, constant_values=value)


def _tile_sum(x):
    """[R, C] -> (1, 1): lane reduce then sublane reduce."""
    return jnp.sum(jnp.sum(x, axis=-1, keepdims=True), axis=0, keepdims=True)


def _out_iotas():
    sub = lax.broadcasted_iota(jnp.int32, (_OUT_SUBS, _OUT_LANES), 0)
    lane = lax.broadcasted_iota(jnp.int32, (_OUT_SUBS, _OUT_LANES), 1)
    return sub, lane


# --------------------------------------------------------------------------- kernels

def _pairwise_kernel(*refs, has_neg):
    """grid=(nb,), "parallel". Inputs pre-normalized, zero-padded rows.
    Writes its private (8,128) output block: [0,0]=sum cos(e,p), [0,1]=sum cos(e,n)."""
    if has_neg:
        emb_ref, pos_ref, neg_ref, out_ref = refs
    else:
        emb_ref, pos_ref, out_ref = refs
        neg_ref = None

    sub, lane = _out_iotas()
    e = emb_ref[...]                                     # [TB, D] f32
    out = jnp.where((sub == 0) & (lane == 0), _tile_sum(e * pos_ref[...]), 0.0)
    if has_neg:
        out = out + jnp.where((sub == 0) & (lane == 1), _tile_sum(e * neg_ref[...]), 0.0)
    out_ref[...] = out


def _fused_kernel(*refs, TB, has_neg):
    """Triangular grid=(K,), K = nb*(nb+1)/2 upper-triangular (i, j>=i) tile pairs,
    schedule prefetched into SMEM. Per anchor row-block i the resident (8,128) output
    block accumulates: [0,0]=sum cos(e,p), [0,1]=sum cos(e,n), [0,2]=masked soft-neg sum.
    Inputs are pre-normalized and zero-padded; the pair count lives in the wrapper."""
    if has_neg:
        it_ref, jt_ref, ei_ref, ej_ref, ci_ref, cj_ref, pos_ref, neg_ref, out_ref = refs
    else:
        it_ref, jt_ref, ei_ref, ej_ref, ci_ref, cj_ref, pos_ref, out_ref = refs
        neg_ref = None

    k = pl.program_id(0)
    i = it_ref[k]
    j = jt_ref[k]

    ei = ei_ref[...]                                     # [TB, D] anchor rows
    # Gram tile on the MXU: contract the feature dim of both operands (no XLU transpose).
    gram = lax.dot_general(ei, ej_ref[...],
                           dimension_numbers=(((1,), (1,)), ((), ())),
                           preferred_element_type=jnp.float32)           # [TB, TB]
    diff = ci_ref[...] != cj_ref[...]                    # [TB,1] vs [1,TB] -> [TB,TB]

    sub, lane = _out_iotas()
    sel_soft = (sub == 0) & (lane == 2)

    @pl.when(i == j)
    def _row_start():
        # First (diagonal) step of row-block i: init the output block, fold in the
        # pairwise terms (exactly once per i) and the triangular-masked diagonal tile.
        tri = (lax.broadcasted_iota(jnp.int32, (TB, TB), 0)
               < lax.broadcasted_iota(jnp.int32, (TB, TB), 1))
        acc = jnp.where(sel_soft, _tile_sum(jnp.where(diff & tri, gram, 0.0)), 0.0)
        acc = acc + jnp.where((sub == 0) & (lane == 0),
                              _tile_sum(ei * pos_ref[...]), 0.0)
        if has_neg:
            acc = acc + jnp.where((sub == 0) & (lane == 1),
                                  _tile_sum(ei * neg_ref[...]), 0.0)
        out_ref[...] = acc

    @pl.when(i != j)
    def _off_diag():
        # Strictly-upper tile: every (gi, gj) already has gi < gj, and padded rows/cols
        # contribute exactly 0, so only the class mask is needed.
        out_ref[...] = out_ref[...] + jnp.where(
            sel_soft, _tile_sum(jnp.where(diff, gram, 0.0)), 0.0)


# --------------------------------------------------------------------------- tiling

def _stream_bytes(tb, D, n_streams, tb2_factor):
    # double-buffered f32 [TB, D] streams + f32 [TB, TB]-sized in-kernel temporaries
    return n_streams * 2 * tb * D * 4 + tb2_factor * tb * tb * 4


def _choose_tb(B, D, n_streams, *, tb2_factor, single_tile_cap, tiled_cands):
    full = _round_up(B, 8)
    if full <= single_tile_cap and _stream_bytes(full, D, n_streams, tb2_factor) <= _TILE_BUDGET:
        return full
    for tb in tiled_cands:
        if (_stream_bytes(tb, D, n_streams, tb2_factor) <= _TILE_BUDGET
                and (_round_up(B, tb) - B) * 8 <= B):
            return tb
    # TODO(synk): tile the feature dim too when even TB=128 exceeds the VMEM budget.
    return 128


# --------------------------------------------------------------------------- wrapper

def contrastive_embedding_objective(embeddings, pos_embeddings, neg_embeddings,
                                    tau=0.1, batch_soft_negatives=False,
                                    embeddings_class=None, tile_b=None):
    """JAX/Pallas equivalent of ContrastiveEmbeddingObjective.forward (reduction='mean')."""
    B, D = embeddings.shape
    has_neg = neg_embeddings is not None
    inv_btau = 1.0 / (B * tau)

    # Normalization hoisted out of the kernels: one fused mem-bound pass per input,
    # amortized over every tile reuse inside the Gram loop. Stored in f32.
    # TODO(synk): optional bf16 Gram operands for v5e MXU throughput (tolerance decision).
    e = _normalize_rows(embeddings)
    p = _normalize_rows(pos_embeddings)
    n = _normalize_rows(neg_embeddings) if has_neg else None

    if not batch_soft_negatives:
        n_streams = 2 + int(has_neg)
        TB = int(tile_b) if tile_b is not None else _choose_tb(
            B, D, n_streams, tb2_factor=0, single_tile_cap=1024,
            tiled_cands=(1024, 512, 256))
        assert TB % 8 == 0, "batch tile must be a multiple of 8"
        Bp = _round_up(B, TB)
        nb = Bp // TB

        args = [_pad_rows(e, Bp), _pad_rows(p, Bp)]
        in_specs = [pl.BlockSpec((TB, D), lambda i: (i, 0)),
                    pl.BlockSpec((TB, D), lambda i: (i, 0))]
        if has_neg:
            args.append(_pad_rows(n, Bp))
            in_specs.append(pl.BlockSpec((TB, D), lambda i: (i, 0)))

        partials = pl.pallas_call(
            functools.partial(_pairwise_kernel, has_neg=has_neg),
            grid=(nb,),
            in_specs=in_specs,
            out_specs=pl.BlockSpec((_OUT_SUBS, _OUT_LANES), lambda i: (i, 0)),
            out_shape=jax.ShapeDtypeStruct((nb * _OUT_SUBS, _OUT_LANES), jnp.float32),
            compiler_params=pltpu.CompilerParams(
                dimension_semantics=("parallel",),   # per-i output rows -> megacore-safe
                vmem_limit_bytes=_VMEM_LIMIT),
        )(*args)

        pos_loss = -jnp.sum(partials[:, 0]) * inv_btau
        neg_loss = jnp.sum(partials[:, 1]) * inv_btau if has_neg else 0.0
        # TODO(synk): 'covariance'/'spectral_norm' regularization, reduction != 'mean' and
        # return_soft_negatives are not implemented (default config => +0 / unused).
        return pos_loss + neg_loss

    # ---- batch_soft_negatives=True: fused pairwise + soft-negative Gram kernel ----
    if embeddings_class is None:
        raise ValueError("Must provide embeddings_class if using batch_soft_negatives")

    n_streams = 3 + int(has_neg)
    TB = int(tile_b) if tile_b is not None else _choose_tb(
        B, D, n_streams, tb2_factor=6, single_tile_cap=512, tiled_cands=(512, 256))
    assert TB % 8 == 0, "batch tile must be a multiple of 8"
    Bp = _round_up(B, TB)
    nb = Bp // TB
    assert nb == 1 or TB % 128 == 0, "multi-tile soft-negative path needs a 128-multiple tile"

    cls = jnp.asarray(embeddings_class).astype(jnp.int32).reshape(B)
    # Masked-pair count in the wrapper: C(B,2) minus same-class pairs (via one sort),
    # so the kernel never counts the mask.
    srt = jnp.sort(cls)
    first = jnp.searchsorted(srt, srt, side="left").astype(jnp.int32)
    same_pairs = jnp.sum(jnp.arange(B, dtype=jnp.int32) - first)
    soft_cnt = jnp.asarray(B * (B - 1) // 2, jnp.int32) - same_pairs

    e_pad = _pad_rows(e, Bp)
    p_pad = _pad_rows(p, Bp)
    cls_col = _pad_rows(cls.reshape(B, 1), Bp, value=-1)
    cls_row = cls_col.reshape(1, Bp)

    # Upper-triangular tile schedule (diagonal tile first within each anchor row-block).
    ii, jj = np.triu_indices(nb)
    i_tab = jnp.asarray(ii, dtype=jnp.int32)
    j_tab = jnp.asarray(jj, dtype=jnp.int32)
    K = int(ii.shape[0])

    in_specs = [
        pl.BlockSpec((TB, D), lambda k, it, jt: (it[k], 0)),   # anchor rows e_i
        pl.BlockSpec((TB, D), lambda k, it, jt: (jt[k], 0)),   # soft-negative rows e_j
        pl.BlockSpec((TB, 1), lambda k, it, jt: (it[k], 0)),   # classes (column layout)
        pl.BlockSpec((1, TB), lambda k, it, jt: (0, jt[k])),   # classes (row layout)
        pl.BlockSpec((TB, D), lambda k, it, jt: (it[k], 0)),   # positives
    ]
    args = [e_pad, e_pad, cls_col, cls_row, p_pad]
    if has_neg:
        in_specs.append(pl.BlockSpec((TB, D), lambda k, it, jt: (it[k], 0)))
        args.append(_pad_rows(n, Bp))

    # TODO(synk): v7x-only extra ~2x would need splitting the triangle across both
    # TensorCores (per-core step tables); the triangular schedule itself already removes
    # the lower-half work on every generation.
    partials = pl.pallas_call(
        functools.partial(_fused_kernel, TB=TB, has_neg=has_neg),
        grid_spec=pltpu.PrefetchScalarGridSpec(
            num_scalar_prefetch=2,
            grid=(K,),
            in_specs=in_specs,
            out_specs=pl.BlockSpec((_OUT_SUBS, _OUT_LANES), lambda k, it, jt: (it[k], 0)),
        ),
        out_shape=jax.ShapeDtypeStruct((nb * _OUT_SUBS, _OUT_LANES), jnp.float32),
        compiler_params=pltpu.CompilerParams(
            dimension_semantics=("arbitrary",),
            vmem_limit_bytes=_VMEM_LIMIT),
    )(i_tab, j_tab, *args)

    pos_loss = -jnp.sum(partials[:, 0]) * inv_btau
    neg_loss = jnp.sum(partials[:, 1]) * inv_btau if has_neg else 0.0
    cntf = soft_cnt.astype(jnp.float32)
    soft_sum = jnp.sum(partials[:, 2])
    # Empty mask -> 0 (PyTorch replaces the NaN mean of an empty selection with 0 as well).
    soft_loss = jnp.where(cntf > 0.5, soft_sum / (jnp.maximum(cntf, 1.0) * tau), 0.0)
    # TODO(synk): 'covariance'/'spectral_norm' regularization, reduction != 'mean' and
    # return_soft_negatives are not implemented (default config => +0 / unused).
    return pos_loss + neg_loss + soft_loss


# --------------------------------------------------------------------------- reference

def _reference(embeddings, pos, neg, tau, batch_soft_negatives, cls):
    """Pure-JAX mirror of the PyTorch forward (reduction='mean'), keeping -log(exp(.))."""
    def _norm_rows(x):
        nrm = jnp.maximum(jnp.linalg.norm(x, axis=-1, keepdims=True), _EPS)
        return x / nrm

    e = _norm_rows(embeddings)
    pos_dist = jnp.sum(e * _norm_rows(pos), axis=-1)
    neg_dist = jnp.sum(e * _norm_rows(neg), axis=-1) if neg is not None else jnp.float32(0.0)
    pos_loss = jnp.mean(-jnp.log(jnp.exp(pos_dist / tau)))
    neg_loss = jnp.mean(-jnp.log(jnp.exp(-neg_dist / tau)))
    loss = pos_loss + neg_loss
    if batch_soft_negatives:
        sim = e @ e.T
        mask = jnp.triu(cls[:, None] != cls[None, :], k=1)
        terms = -jnp.log(jnp.exp(-sim / tau))
        cnt = jnp.sum(mask)
        soft = jnp.where(cnt > 0, jnp.sum(jnp.where(mask, terms, 0.0)) / cnt, 0.0)
        loss = loss + soft
    return loss


if __name__ == "__main__":
    key = jax.random.PRNGKey(0)
    k1, k2, k3, k4, k5, k6, k7 = jax.random.split(key, 7)
    B, D = 8, 32
    emb = jax.random.normal(k1, (B, D), dtype=jnp.float32)
    pos = jax.random.normal(k2, (B, D), dtype=jnp.float32)
    neg = jax.random.normal(k3, (B, D), dtype=jnp.float32)
    cls = jax.random.randint(k4, (B,), 0, 3, dtype=jnp.int32)

    out1 = contrastive_embedding_objective(emb, pos, neg, tau=0.1)
    out2 = contrastive_embedding_objective(emb, pos, neg, tau=0.1,
                                           batch_soft_negatives=True, embeddings_class=cls)
    out3 = contrastive_embedding_objective(emb, pos, None, tau=0.1)
    out4 = contrastive_embedding_objective(emb, pos, None, tau=0.1,
                                           batch_soft_negatives=True, embeddings_class=cls)

    # Multi-tile pairwise path with zero-padded rows (B not a multiple of the tile).
    B2 = 12
    emb2 = jax.random.normal(k5, (B2, D), dtype=jnp.float32)
    pos2 = jax.random.normal(k6, (B2, D), dtype=jnp.float32)
    neg2 = jax.random.normal(k7, (B2, D), dtype=jnp.float32)
    out5 = contrastive_embedding_objective(emb2, pos2, neg2, tau=0.1, tile_b=8)

    # Multi-tile triangular soft-negative path (nb=2 -> 3 upper-tri tile pairs), padded batch.
    B3 = 200
    emb3 = jax.random.normal(k1, (B3, D), dtype=jnp.float32)
    pos3 = jax.random.normal(k2, (B3, D), dtype=jnp.float32)
    neg3 = jax.random.normal(k3, (B3, D), dtype=jnp.float32)
    cls3 = jax.random.randint(k4, (B3,), 0, 4, dtype=jnp.int32)
    out6 = contrastive_embedding_objective(emb3, pos3, neg3, tau=0.1, tile_b=128,
                                           batch_soft_negatives=True, embeddings_class=cls3)

    jax.block_until_ready((out1, out2, out3, out4, out5, out6))

    checks = [
        (out1, _reference(emb, pos, neg, 0.1, False, None), "pairwise"),
        (out2, _reference(emb, pos, neg, 0.1, True, cls), "soft_neg"),
        (out3, _reference(emb, pos, None, 0.1, False, None), "no_neg"),
        (out4, _reference(emb, pos, None, 0.1, True, cls), "soft_neg_no_neg"),
        (out5, _reference(emb2, pos2, neg2, 0.1, False, None), "pairwise_padded"),
        (out6, _reference(emb3, pos3, neg3, 0.1, True, cls3), "soft_neg_tiled"),
    ]
    for got, want, name in checks:
        assert np.allclose(np.asarray(got), np.asarray(want), rtol=5e-4, atol=5e-4), \
            (name, got, want)

    print("KERNEL_OK")
</pallas_src>

<mosaic_0001>
module attributes {stable_mosaic.version = 11 : i64} {
  func.func @_pairwise_kernel(%arg0: i32, %arg1: memref<8x32xf32, #tpu.memory_space<vmem>>, %arg2: memref<8x32xf32, #tpu.memory_space<vmem>>, %arg3: memref<8x32xf32, #tpu.memory_space<vmem>>, %arg4: memref<8x128xf32, #tpu.memory_space<vmem>>) attributes {dimension_semantics = [#tpu.dimension_semantics<parallel>], iteration_bounds = array<i64: 1>, scalar_prefetch = 0 : i64, scratch_operands = 0 : i64, tpu.core_type = #tpu.core_type<tc>, window_params = [{transform_indices = @transform_0, window_bounds = array<i64: 8, 32>}, {transform_indices = @transform_1, window_bounds = array<i64: 8, 32>}, {transform_indices = @transform_2, window_bounds = array<i64: 8, 32>}, {transform_indices = @transform_3, window_bounds = array<i64: 8, 128>}]} {
    %0 = tpu.iota {dimensions = array<i32: 0>} : vector<8x128xi32>
    %1 = tpu.iota {dimensions = array<i32: 1>} : vector<8x128xi32>
    %c0 = arith.constant 0 : index
    %c0_0 = arith.constant 0 : index
    %2 = vector.load %arg1[%c0, %c0_0] : memref<8x32xf32, #tpu.memory_space<vmem>>, vector<8x32xf32>
    %c0_i32 = arith.constant 0 : i32
    %3 = vector.broadcast %c0_i32 : i32 to vector<8x128xi32>
    %4 = arith.cmpi eq, %0, %3 : vector<8x128xi32>
    %c0_i32_1 = arith.constant 0 : i32
    %5 = vector.broadcast %c0_i32_1 : i32 to vector<8x128xi32>
    %6 = arith.cmpi eq, %1, %5 : vector<8x128xi32>
    %7 = arith.andi %4, %6 : vector<8x128xi1>
    %c0_2 = arith.constant 0 : index
    %c0_3 = arith.constant 0 : index
    %8 = vector.load %arg2[%c0_2, %c0_3] : memref<8x32xf32, #tpu.memory_space<vmem>>, vector<8x32xf32>
    %9 = arith.mulf %2, %8 : vector<8x32xf32>
    %cst = arith.constant dense<0.000000e+00> : vector<8xf32>
    %10 = vector.multi_reduction <add>, %9, %cst [1] : vector<8x32xf32> to vector<8xf32>
    %11 = vector.shape_cast %10 : vector<8xf32> to vector<8x1xf32>
    %cst_4 = arith.constant dense<0.000000e+00> : vector<1xf32>
    %12 = vector.multi_reduction <add>, %11, %cst_4 [0] : vector<8x1xf32> to vector<1xf32>
    %13 = vector.shape_cast %12 : vector<1xf32> to vector<1x1xf32>
    %cst_5 = arith.constant 0.000000e+00 : f32
    %14 = vector.shape_cast %13 : vector<1x1xf32> to vector<1x1xf32>
    %15 = vector.broadcast %14 : vector<1x1xf32> to vector<8x128xf32>
    %16 = vector.broadcast %cst_5 : f32 to vector<8x128xf32>
    %17 = arith.select %7, %15, %16 : vector<8x128xi1>, vector<8x128xf32>
    %c0_i32_6 = arith.constant 0 : i32
    %18 = vector.broadcast %c0_i32_6 : i32 to vector<8x128xi32>
    %19 = arith.cmpi eq, %0, %18 : vector<8x128xi32>
    %c1_i32 = arith.constant 1 : i32
    %20 = vector.broadcast %c1_i32 : i32 to vector<8x128xi32>
    %21 = arith.cmpi eq, %1, %20 : vector<8x128xi32>
    %22 = arith.andi %19, %21 : vector<8x128xi1>
    %c0_7 = arith.constant 0 : index
    %c0_8 = arith.constant 0 : index
    %23 = vector.load %arg3[%c0_7, %c0_8] : memref<8x32xf32, #tpu.memory_space<vmem>>, vector<8x32xf32>
    %24 = arith.mulf %2, %23 : vector<8x32xf32>
    %cst_9 = arith.constant dense<0.000000e+00> : vector<8xf32>
    %25 = vector.multi_reduction <add>, %24, %cst_9 [1] : vector<8x32xf32> to vector<8xf32>
    %26 = vector.shape_cast %25 : vector<8xf32> to vector<8x1xf32>
    %cst_10 = arith.constant dense<0.000000e+00> : vector<1xf32>
    %27 = vector.multi_reduction <add>, %26, %cst_10 [0] : vector<8x1xf32> to vector<1xf32>
    %28 = vector.shape_cast %27 : vector<1xf32> to vector<1x1xf32>
    %cst_11 = arith.constant 0.000000e+00 : f32
    %29 = vector.shape_cast %28 : vector<1x1xf32> to vector<1x1xf32>
    %30 = vector.broadcast %29 : vector<1x1xf32> to vector<8x128xf32>
    %31 = vector.broadcast %cst_11 : f32 to vector<8x128xf32>
    %32 = arith.select %22, %30, %31 : vector<8x128xi1>, vector<8x128xf32>
    %33 = arith.addf %17, %32 : vector<8x128xf32>
    %c0_12 = arith.constant 0 : index
    %c0_13 = arith.constant 0 : index
    %34 = vector.load %arg4[%c0_12, %c0_13] : memref<8x128xf32, #tpu.memory_space<vmem>>, vector<8x128xf32>
    tpu.vector_store %arg4[%c0_12, %c0_13], %33 {strides = array<i32>} : memref<8x128xf32, #tpu.memory_space<vmem>>, vector<8x128xf32>,
    return
  }
  func.func @transform_0(%arg0: i32) -> (i32, i32) {
    %c0_i32 = arith.constant 0 : i32
    %c0_i32_0 = arith.constant 0 : i32
    return %arg0, %c0_i32 : i32, i32
  }
  func.func @transform_1(%arg0: i32) -> (i32, i32) {
    %c0_i32 = arith.constant 0 : i32
    %c0_i32_0 = arith.constant 0 : i32
    return %arg0, %c0_i32 : i32, i32
  }
  func.func @transform_2(%arg0: i32) -> (i32, i32) {
    %c0_i32 = arith.constant 0 : i32
    %c0_i32_0 = arith.constant 0 : i32
    return %arg0, %c0_i32 : i32, i32
  }
  func.func @transform_3(%arg0: i32) -> (i32, i32) {
    %c0_i32 = arith.constant 0 : i32
    %c0_i32_0 = arith.constant 0 : i32
    return %arg0, %c0_i32 : i32, i32
  }
}

</mosaic_0001>

<bundles_post_ra>
// kernel: tpu_custom_call.1
= control target key start
LH: loop header
LB: loop body
LE: loop exit
PB: predicated region body
PF: predicated region fallthrough
CT: control target
= control target key end

     0   :  { %8 = vsyncpa [#allocation3], 0  ;;  %s273_s0 = inlined_call_operand.hbm [shape: f32[8,32], index: 0, kind: input, shape index: {}]   ;;  %s274_s1 = inlined_call_operand.hbm [shape: f32[8,32], index: 1, kind: input, shape index: {}]   ;;  %s275_s2 = inlined_call_operand.hbm [shape: f32[8,32], index: 2, kind: input, shape index: {}]   ;;  %s276_s3 = inlined_call_operand.hbm [shape: f32[8,128], index: 3, kind: output, shape index: {}]  }
   0x1   :  { %9 = vsyncpa [#allocation6], 0 }
   0x2   :  { %10 = vsyncpa [#allocation4], 0  ;;  %s201_s12 = smov [#allocation5]   ;;  %s202_s14 = smov [#allocation2]  }
   0x3   :  { %s27_s13 = sshll.u32 %s201_s12, 4  ;;  %s17_s15 = sshll.u32 %s202_s14, 4  ;;  %s28_s13 = int_to_ptr.vmem [resolvable:$true] %s27_s13  ;;  %s18_s15 = int_to_ptr.vmem [resolvable:$true] %s17_s15 }
   0x4   :  { %s107_s18 = scalar_lea.hbm %s274_s1, 128 }
   0x5   :  { %p108_p0 = scmp.ne.s32.totalorder %s274_s1, %s107_s18  ;;  %p111_p1 = scmp.lt.u32.totalorder %s107_s18, %s274_s1 }
   0x7   :  { %p113_p2 = pnand %p111_p1, %p108_p0 }
   0x9   :  { %116 = shalt.err (!%p113_p2)
}
   0xa   :  { %s117_s23 = scalar_lea.vmem %s28_s13, 128  ;;  %p122_p4 = scmp.lt.s32.totalorder %s28_s13, %s28_s13 }
   0xb   :  { %p118_p3 = scmp.ne.s32.totalorder %s28_s13, %s117_s23  ;;  %p123_p5 = scmp.lt.s32.totalorder %s117_s23, %s117_s23 }
   0xd   :  { %p124_p6 = por %p123_p5, %p122_p4 }
   0xf   :  { %p125_p7 = pnand %p124_p6, %p118_p3 }
  0x11   :  { %128 = shalt.err (!%p125_p7)
}
  0x12   :  { %30 = dma.hbm_to_vmem [thread:$0]  %s274_s1, 128, %s28_s13, [#allocation6]  }
  0x13   :  { %s129_s28 = scalar_lea.hbm %s273_s0, 128 }
  0x14   :  { %p130_p8 = scmp.ne.s32.totalorder %s273_s0, %s129_s28  ;;  %p133_p9 = scmp.lt.u32.totalorder %s129_s28, %s273_s0 }
  0x16   :  { %p135_p10 = pnand %p133_p9, %p130_p8 }
  0x18   :  { %138 = shalt.err (!%p135_p10)
}
  0x19   :  { %s139_s6 = scalar_lea.vmem %s18_s15, 128  ;;  %p144_p12 = scmp.lt.s32.totalorder %s18_s15, %s18_s15 }
  0x1a   :  { %p140_p11 = scmp.ne.s32.totalorder %s18_s15, %s139_s6  ;;  %p145_p13 = scmp.lt.s32.totalorder %s139_s6, %s139_s6 }
  0x1c   :  { %p146_p0 = por %p145_p13, %p144_p12 }
  0x1e   :  { %p147_p1 = pnand %p146_p0, %p140_p11 }
  0x20   :  { %150 = shalt.err (!%p147_p1)
}
  0x21   :  { %20 = dma.hbm_to_vmem [thread:$0]  %s273_s0, 128, %s18_s15, [#allocation3]  }
  0x22   :  { %s203_s8 = smov [#allocation7]   ;;  %s151_s12 = scalar_lea.hbm %s275_s2, 128 }
  0x23   :  { %s37_s9 = sshll.u32 %s203_s8, 4  ;;  %p152_p2 = scmp.ne.s32.totalorder %s275_s2, %s151_s12  ;;  %s38_s9 = int_to_ptr.vmem [resolvable:$true] %s37_s9 }
  0x24   :  { %p155_p3 = scmp.lt.u32.totalorder %s151_s12, %s275_s2 }
  0x26   :  { %p157_p4 = pnand %p155_p3, %p152_p2 }
  0x28   :  { %160 = shalt.err (!%p157_p4)
}
  0x29   :  { %s161_s18 = scalar_lea.vmem %s38_s9, 128  ;;  %p166_p6 = scmp.lt.s32.totalorder %s38_s9, %s38_s9 }
  0x2a   :  { %p162_p5 = scmp.ne.s32.totalorder %s38_s9, %s161_s18  ;;  %p167_p7 = scmp.lt.s32.totalorder %s161_s18, %s161_s18 }
  0x2c   :  { %p168_p8 = por %p167_p7, %p166_p6 }
  0x2e   :  { %p169_p9 = pnand %p168_p8, %p162_p5 }
  0x30   :  { %172 = shalt.err (!%p169_p9)
}
  0x31   :  { %40 = dma.hbm_to_vmem [thread:$0]  %s275_s2, 128, %s38_s9, [#allocation6]  }
  0x32   :  { %195 = dma.done.wait [#allocation3], 128  }
  0x33   :  { %196 = vsyncadd [#allocation3], 4294967168 }
  0x34   :  { %197 = dma.done.wait [#allocation6], 256  }
  0x35   :  { %198 = vsyncadd [#allocation6], 4294967040  ;;  %v54_v0 = vld [vmem:[#allocation2] sm:$0xff]  ;;  %v58_v1 = vld [vmem:[#allocation5] sm:$0xff]  ;;  %vm60_vm0 = vcmask 261120   ;;  %v50_v9 = vlaneseq  ;;  %s204_s2 = smov [#allocation8]  }
  0x36   :  { %v73_v2 = vld [vmem:[#allocation7] sm:$0xff]  ;;  %v59_v3 = vmul.f32 %v58_v1, %v54_v0  ;;  %s93_s19 = sshll.u32 %s204_s2, 4  ;;  %s94_s19 = int_to_ptr.vmem [resolvable:$true] %s93_s19 }
  0x37   :  { %v74_v4 = vmul.f32 %v73_v2, %v54_v0  ;;  %v51_v14 = vshrl.u32 %v50_v9, 7  ;;  %v53_v15 = vand.u32 127, %v50_v9  ;;  %s173_s20 = scalar_lea.vmem %s94_s19, 128  ;;  %p178_p11 = scmp.lt.s32.totalorder %s94_s19, %s94_s19 }
  0x38   :  { %v61_v5 = vsel %vm60_vm0, %v59_v3, 0.0  ;;  %p174_p10 = scmp.ne.s32.totalorder %s94_s19, %s173_s20  ;;  %p179_p12 = scmp.lt.s32.totalorder %s173_s20, %s173_s20 }
  0x39   :  { %62 = vadd.xlane.f32.xlu0 %v61_v5  ;;  %v75_v6 = vsel %vm60_vm0, %v74_v4, 0.0  ;;  %vm55_vm1 = vcmp.eq.s32.totalorder %v51_v14, 0  ;;  %vm56_vm2 = vcmp.eq.s32.totalorder %v53_v15, 0  ;;  %vm71_vm3 = vcmp.eq.s32.totalorder %v53_v15, 1 }
  0x3a   :  { %vm57_vm4 = vmand %vm55_vm1, %vm56_vm2  ;;  %p180_p13 = por %p179_p12, %p178_p11 }
  0x3b   :  { %vm72_vm5 = vmand %vm55_vm1, %vm71_vm3 }
  0x3c   :  { %p181_p0 = pnand %p180_p13, %p174_p10 }
  0x3d   :  { %76 = vadd.xlane.f32.xlu0 %v75_v6 }
  0xc6   :  { %v63_v7 = vpop.xlane.xlu0 %62 }
  0xc7   :  { %v64_v8 = vrot.slane %v63_v7, 4 }
  0xc9   :  { %v65_v10 = vadd.f32 %v64_v8, %v63_v7 }
  0xca   :  { %v77_v11 = vpop.xlane.xlu0 %76 }
  0xcb   :  { %v66_v12 = vrot.slane %v65_v10, 2  ;;  %v78_v13 = vrot.slane %v77_v11, 4 }
  0xcd   :  { %v67_v16 = vadd.f32 %v66_v12, %v65_v10  ;;  %v79_v17 = vadd.f32 %v78_v13, %v77_v11 }
  0xcf   :  { %v68_v18 = vrot.slane %v67_v16, 1  ;;  %v80_v19 = vrot.slane %v79_v17, 2 }
  0xd1   :  { %v81_v20 = vadd.f32 %v80_v19, %v79_v17  ;;  %v69_v21 = vadd.f32 %v68_v18, %v67_v16 }
  0xd3   :  { %v82_v22 = vrot.slane %v81_v20, 1  ;;  %v70_v24 = vsel %vm57_vm4, %v69_v21, 0.0 }
  0xd5   :  { %v83_v23 = vadd.f32 %v82_v22, %v81_v20 }
  0xd7   :  { %v84_v25 = vsel %vm72_vm5, %v83_v23, 0.0 }
  0xd8   :  { %v85_v26 = vadd.f32 %v84_v25, %v70_v24 }
  0xda   :  { %86 = vst [vmem:[#allocation8] sm:$0xff] %v85_v26 }
  0xdb   :  { %184 = shalt.err (!%p181_p0)
}
  0xdc   :  { %s185_s23 = scalar_lea.hbm %s276_s3, 128 }
  0xdd   :  { %p186_p1 = scmp.ne.s32.totalorder %s276_s3, %s185_s23  ;;  %p189_p2 = scmp.lt.u32.totalorder %s185_s23, %s276_s3 }
  0xdf   :  { %p191_p3 = pnand %p189_p2, %p186_p1 }
  0xe1   :  { %194 = shalt.err (!%p191_p3)
}
  0xe2   :  { %96 = dma.vmem_to_hbm [thread:$0]  %s94_s19, 128, %s276_s3, [#allocation4]  }
  0xe3   :  { %199 = dma.done.wait [#allocation4], 128  }
  0xe4   :  { %200 = vsyncadd [#allocation4], 4294967168 }
  0xe5   :  { %100 = vsyncpa [#allocation3], 1 }
  0xe6   :  { %101 = vsyncpa [#allocation6], 1 }
  0xe7   :  { %102 = vsyncpa [#allocation4], 1 }

</bundles_post_ra>
